<compile_context>
chip_gen: v7x
topology: tpu7x:2x2x1
jax: 0.10.0
libtpu: 0.0.40
codegen_flags: <defaults>
</compile_context>

<pallas_src>
import functools
import math

import jax
import jax.numpy as jnp
from jax.experimental import pallas as pl
from jax.experimental.pallas import tpu as pltpu


# ----------------------------- activations ---------------------------------
def _leaky_relu(x):
    # torch.nn.LeakyReLU default negative_slope = 0.01
    return jnp.where(x > 0, x, 0.01 * x)


def _gelu(x):
    # torch.nn.GELU default: exact (erf) formulation
    return 0.5 * x * (1.0 + jax.lax.erf(x * (1.0 / math.sqrt(2.0))))


# ----------------------- fused MultiHeads forward kernel --------------------
def _fused_kernel(q_in_ref, x_kv_ref, wslab_ref, bslab_ref, o_ref, *,
                  b_sz, heads, nq, nkv, q_dim, v_dim, out_dim, scale,
                  w_off, b_off):
    f32, bf16 = jnp.float32, jnp.bfloat16

    def dense(x, name, d_in, d_out):
        # Static views into the packed weight / bias slabs (no per-op DMA).
        r = w_off[name]
        w = wslab_ref[r:r + d_in, :d_out]                     # bf16 (d_in, d_out)
        bias = bslab_ref[b_off[name]:b_off[name] + 1, :d_out]  # f32 (1, d_out)
        return jnp.dot(x.astype(bf16), w, preferred_element_type=f32) + bias

    # ---- proj_q on the whole batch: (B*Nq, q_dim) -> (B*Nq, out_dim)
    q = _gelu(dense(_leaky_relu(dense(q_in_ref[...], "q1", q_dim, q_dim)),
                    "q2", q_dim, out_dim))
    # Fold the attention scale into q once (shared by every head).
    q_scaled = (q * scale).astype(bf16)
    # Broadcast across heads once, head-major: (H, B, Nq, D) -> (H*B, Nq, D)
    qb = jnp.broadcast_to(
        q_scaled.reshape(1, b_sz, nq, out_dim),
        (heads, b_sz, nq, out_dim)).reshape(heads * b_sz, nq, out_dim)

    # ---- proj_k / proj_v on the shared token slab (H*B*Nkv, v_dim)
    x = x_kv_ref[...]
    k = _gelu(dense(_leaky_relu(dense(x, "k1", v_dim, v_dim)), "k2", v_dim, out_dim))
    v = _gelu(dense(_leaky_relu(dense(x, "v1", v_dim, v_dim)), "v2", v_dim, out_dim))
    k3 = k.astype(bf16).reshape(heads * b_sz, nkv, out_dim)   # free leading reshape
    v3 = v.astype(bf16).reshape(heads * b_sz, nkv, out_dim)

    # ---- attention, batched over the (H*B) head axis (flash-style einsums)
    s = jnp.einsum('bqd,bkd->bqk', qb, k3, preferred_element_type=f32)
    s = s - jnp.max(s, axis=-1, keepdims=True)
    p = jnp.exp(s)
    p = p * pl.reciprocal(jnp.sum(p, axis=-1, keepdims=True), approx=True)
    enh = jnp.einsum('bqk,bkd->bqd', p.astype(bf16), v3,
                     preferred_element_type=f32)               # (H*B, Nq, D)

    # ---- proj_out as one flat 2-D MLP over all (head, batch, query) tokens
    enh2 = enh.reshape(heads * b_sz * nq, out_dim)
    ho = _gelu(dense(_leaky_relu(dense(enh2, "o1", out_dim, out_dim)),
                     "o2", out_dim, out_dim))                  # (H*B*Nq, out_dim)

    # ---- final_out layer-1: head-accumulated batched matmul
    # Equivalent to rearrange '(b h) n c -> b n (h c)' followed by Linear,
    # but with zero lane/sublane shuffles.
    ho3 = ho.astype(bf16).reshape(heads, b_sz * nq, out_dim)
    rf = w_off["f1"]
    wf1 = wslab_ref[rf:rf + heads * out_dim, :out_dim].reshape(
        heads, out_dim, out_dim)
    pre = jnp.einsum('hmc,hcd->hmd', ho3, wf1,
                     preferred_element_type=f32).sum(axis=0)    # (B*Nq, out_dim)
    pre = pre + bslab_ref[b_off["f1"]:b_off["f1"] + 1, :out_dim]

    out = _leaky_relu(dense(_leaky_relu(pre), "f2", out_dim, out_dim))
    o_ref[...] = out.reshape(b_sz, nq, out_dim).astype(o_ref.dtype)


# ------------------------------ parameters ----------------------------------
def init_linear(key, d_in, d_out):
    # deterministic init matching nn.Linear's default U(-1/sqrt(fan_in), ...)
    kw, kb = jax.random.split(key)
    bound = 1.0 / math.sqrt(d_in)
    w = jax.random.uniform(kw, (d_in, d_out), jnp.float32, -bound, bound)
    b = jax.random.uniform(kb, (d_out,), jnp.float32, -bound, bound)
    return w, b


def init_params(key, heads_num, q_dim, v_dim, out_dim):
    ks = jax.random.split(key, 10)
    return {
        "proj_q": init_linear(ks[0], q_dim, q_dim) + init_linear(ks[1], q_dim, out_dim),
        "proj_k": init_linear(ks[2], v_dim, v_dim) + init_linear(ks[3], v_dim, out_dim),
        "proj_v": init_linear(ks[4], v_dim, v_dim) + init_linear(ks[5], v_dim, out_dim),
        "proj_out": init_linear(ks[6], out_dim, out_dim) + init_linear(ks[7], out_dim, out_dim),
        "final_out": init_linear(ks[8], out_dim * heads_num, out_dim)
        + init_linear(ks[9], out_dim, out_dim),
    }


# -------------------------- weight / bias packing ----------------------------
def _pack_weights(params):
    wq1, bq1, wq2, bq2 = params["proj_q"]
    wk1, bk1, wk2, bk2 = params["proj_k"]
    wv1, bv1, wv2, bv2 = params["proj_v"]
    wo1, bo1, wo2, bo2 = params["proj_out"]
    wf1, bf1, wf2, bf2 = params["final_out"]

    named_w = [("q1", wq1), ("q2", wq2), ("k1", wk1), ("k2", wk2),
               ("v1", wv1), ("v2", wv2), ("o1", wo1), ("o2", wo2),
               ("f1", wf1), ("f2", wf2)]
    named_b = [("q1", bq1), ("q2", bq2), ("k1", bk1), ("k2", bk2),
               ("v1", bv1), ("v2", bv2), ("o1", bo1), ("o2", bo2),
               ("f1", bf1), ("f2", bf2)]

    width = max(w.shape[1] for _, w in named_w)

    w_off, wrows, r = {}, [], 0
    for name, w in named_w:
        w_off[name] = r
        wrows.append(jnp.pad(w, ((0, 0), (0, width - w.shape[1]))))
        r += w.shape[0]
    wslab = jnp.concatenate(wrows, axis=0).astype(jnp.bfloat16)   # one bf16 slab

    b_off, brows = {}, []
    for i, (name, b) in enumerate(named_b):
        b_off[name] = i
        brows.append(jnp.pad(b, (0, width - b.shape[0]))[None, :])
    bslab = jnp.concatenate(brows, axis=0).astype(jnp.float32)    # one f32 slab
    return wslab, bslab, w_off, b_off


# ------------------------------ forward pass --------------------------------
@functools.partial(jax.jit, static_argnames=("heads_num", "out_dim"))
def multi_heads_forward(params, query, fts, heads_num, out_dim):
    B, Nq, q_dim = query.shape
    BH, v_dim, Nkv = fts.shape
    assert BH == B * heads_num
    scale = out_dim ** (-0.5)

    wslab, bslab, w_off, b_off = _pack_weights(params)

    # Flatten query; transpose fts ONCE in the wrapper so the kernel sees a
    # head-major, token-major slab ready for the MXU (no in-kernel transposes).
    q_flat = query.reshape(B * Nq, q_dim)
    x_kv = (fts.reshape(B, heads_num, v_dim, Nkv)
               .transpose(1, 0, 3, 2)                 # (H, B, Nkv, v_dim)
               .reshape(heads_num * B * Nkv, v_dim))

    kernel = functools.partial(
        _fused_kernel, b_sz=B, heads=heads_num, nq=Nq, nkv=Nkv,
        q_dim=q_dim, v_dim=v_dim, out_dim=out_dim, scale=scale,
        w_off=w_off, b_off=b_off)

    # Single fused step: the whole (tiny) problem fits comfortably in VMEM.
    return pl.pallas_call(
        kernel,
        out_shape=jax.ShapeDtypeStruct((B, Nq, out_dim), jnp.float32),
        compiler_params=pltpu.CompilerParams(
            vmem_limit_bytes=16 * 1024 * 1024),
    )(q_flat, x_kv, wslab, bslab)


# --------------------------------- main --------------------------------------
if __name__ == "__main__":
    heads_num, q_dim, v_dim = 2, 32, 16
    out_dim = q_dim  # module default (out_dim=None -> q_dim)
    B, Nq, Nkv = 2, 8, 16

    root = jax.random.PRNGKey(0)
    k_params, k_query, k_fts = jax.random.split(root, 3)

    params = init_params(k_params, heads_num, q_dim, v_dim, out_dim)
    query = jax.random.normal(k_query, (B, Nq, q_dim), jnp.float32)
    fts = jax.random.normal(k_fts, (B * heads_num, v_dim, Nkv), jnp.float32)

    out = multi_heads_forward(params, query, fts, heads_num, out_dim)
    out = jax.block_until_ready(out)
    assert out.shape == (B, Nq, out_dim)
    assert bool(jnp.all(jnp.isfinite(out)))
    print("KERNEL_OK")
</pallas_src>

<mosaic_0001>
module attributes {stable_mosaic.version = 11 : i64} {
  func.func @_fused_kernel(%arg0: memref<16x32xf32, #tpu.memory_space<vmem>>, %arg1: memref<64x16xf32, #tpu.memory_space<vmem>>, %arg2: memref<288x32xbf16, #tpu.memory_space<vmem>>, %arg3: memref<10x32xf32, #tpu.memory_space<vmem>>, %arg4: memref<2x8x32xf32, #tpu.memory_space<vmem>>) attributes {dimension_semantics = [], scalar_prefetch = 0 : i64, scratch_operands = 0 : i64, tpu.core_type = #tpu.core_type<tc>} {
    %c0 = arith.constant 0 : index
    %c0_0 = arith.constant 0 : index
    %0 = vector.load %arg0[%c0, %c0_0] : memref<16x32xf32, #tpu.memory_space<vmem>>, vector<16x32xf32>
    %c0_1 = arith.constant 0 : index
    %c0_2 = arith.constant 0 : index
    %1 = vector.load %arg2[%c0_1, %c0_2] : memref<288x32xbf16, #tpu.memory_space<vmem>>, vector<32x32xbf16>
    %c0_3 = arith.constant 0 : index
    %c0_4 = arith.constant 0 : index
    %2 = vector.load %arg3[%c0_3, %c0_4] : memref<10x32xf32, #tpu.memory_space<vmem>>, vector<1x32xf32>
    %3 = arith.truncf %0 : vector<16x32xf32> to vector<16x32xbf16>
    %cst = arith.constant dense<0.000000e+00> : vector<16x32xf32>
    %4 = tpu.matmul %3, %1, %cst {dimension_numbers = #tpu.dot_dimension_numbers<[1], [0], [0], [1], [0, 0, 1, 1], [], []>} : vector<16x32xbf16>, vector<32x32xbf16>, vector<16x32xf32> -> vector<16x32xf32>
    %5 = vector.broadcast %2 : vector<1x32xf32> to vector<16x32xf32>
    %6 = arith.addf %4, %5 : vector<16x32xf32>
    %cst_5 = arith.constant 0.000000e+00 : f32
    %7 = vector.broadcast %cst_5 : f32 to vector<16x32xf32>
    %8 = arith.cmpf ogt, %6, %7 : vector<16x32xf32>
    %cst_6 = arith.constant 0.00999999977 : f32
    %9 = vector.broadcast %cst_6 : f32 to vector<16x32xf32>
    %10 = arith.mulf %9, %6 : vector<16x32xf32>
    %11 = arith.select %8, %6, %10 : vector<16x32xi1>, vector<16x32xf32>
    %c32 = arith.constant 32 : index
    %c0_7 = arith.constant 0 : index
    %12 = vector.load %arg2[%c32, %c0_7] : memref<288x32xbf16, #tpu.memory_space<vmem>>, vector<32x32xbf16>
    %c1 = arith.constant 1 : index
    %c0_8 = arith.constant 0 : index
    %13 = vector.load %arg3[%c1, %c0_8] : memref<10x32xf32, #tpu.memory_space<vmem>>, vector<1x32xf32>
    %14 = arith.truncf %11 : vector<16x32xf32> to vector<16x32xbf16>
    %cst_9 = arith.constant dense<0.000000e+00> : vector<16x32xf32>
    %15 = tpu.matmul %14, %12, %cst_9 {dimension_numbers = #tpu.dot_dimension_numbers<[1], [0], [0], [1], [0, 0, 1, 1], [], []>} : vector<16x32xbf16>, vector<32x32xbf16>, vector<16x32xf32> -> vector<16x32xf32>
    %16 = vector.broadcast %13 : vector<1x32xf32> to vector<16x32xf32>
    %17 = arith.addf %15, %16 : vector<16x32xf32>
    %cst_10 = arith.constant 5.000000e-01 : f32
    %18 = vector.broadcast %cst_10 : f32 to vector<16x32xf32>
    %19 = arith.mulf %18, %17 : vector<16x32xf32>
    %cst_11 = arith.constant 0.707106769 : f32
    %20 = vector.broadcast %cst_11 : f32 to vector<16x32xf32>
    %21 = arith.mulf %17, %20 : vector<16x32xf32>
    %22 = math.erf %21 : vector<16x32xf32>
    %cst_12 = arith.constant 1.000000e+00 : f32
    %23 = vector.broadcast %cst_12 : f32 to vector<16x32xf32>
    %24 = arith.addf %23, %22 : vector<16x32xf32>
    %25 = arith.mulf %19, %24 : vector<16x32xf32>
    %cst_13 = arith.constant 0.176776692 : f32
    %26 = vector.broadcast %cst_13 : f32 to vector<16x32xf32>
    %27 = arith.mulf %25, %26 : vector<16x32xf32>
    %28 = arith.truncf %27 : vector<16x32xf32> to vector<16x32xbf16>
    %29 = vector.shape_cast %28 : vector<16x32xbf16> to vector<1x2x8x32xbf16>
    %30 = vector.shape_cast %29 : vector<1x2x8x32xbf16> to vector<1x2x8x32xbf16>
    %31 = vector.broadcast %30 : vector<1x2x8x32xbf16> to vector<2x2x8x32xbf16>
    %32 = vector.shape_cast %31 : vector<2x2x8x32xbf16> to vector<4x8x32xbf16>
    %c0_14 = arith.constant 0 : index
    %c0_15 = arith.constant 0 : index
    %33 = vector.load %arg1[%c0_14, %c0_15] : memref<64x16xf32, #tpu.memory_space<vmem>>, vector<64x16xf32>
    %c64 = arith.constant 64 : index
    %c0_16 = arith.constant 0 : index
    %34 = vector.load %arg2[%c64, %c0_16] : memref<288x32xbf16, #tpu.memory_space<vmem>>, vector<16x16xbf16>
    %c2 = arith.constant 2 : index
    %c0_17 = arith.constant 0 : index
    %35 = vector.load %arg3[%c2, %c0_17] : memref<10x32xf32, #tpu.memory_space<vmem>>, vector<1x16xf32>
    %36 = arith.truncf %33 : vector<64x16xf32> to vector<64x16xbf16>
    %cst_18 = arith.constant dense<0.000000e+00> : vector<64x16xf32>
    %37 = tpu.matmul %36, %34, %cst_18 {dimension_numbers = #tpu.dot_dimension_numbers<[1], [0], [0], [1], [0, 0, 1, 1], [], []>} : vector<64x16xbf16>, vector<16x16xbf16>, vector<64x16xf32> -> vector<64x16xf32>
    %38 = vector.broadcast %35 : vector<1x16xf32> to vector<64x16xf32>
    %39 = arith.addf %37, %38 : vector<64x16xf32>
    %cst_19 = arith.constant 0.000000e+00 : f32
    %40 = vector.broadcast %cst_19 : f32 to vector<64x16xf32>
    %41 = arith.cmpf ogt, %39, %40 : vector<64x16xf32>
    %cst_20 = arith.constant 0.00999999977 : f32
    %42 = vector.broadcast %cst_20 : f32 to vector<64x16xf32>
    %43 = arith.mulf %42, %39 : vector<64x16xf32>
    %44 = arith.select %41, %39, %43 : vector<64x16xi1>, vector<64x16xf32>
    %c80 = arith.constant 80 : index
    %c0_21 = arith.constant 0 : index
    %45 = vector.load %arg2[%c80, %c0_21] : memref<288x32xbf16, #tpu.memory_space<vmem>>, vector<16x32xbf16>
    %c3 = arith.constant 3 : index
    %c0_22 = arith.constant 0 : index
    %46 = vector.load %arg3[%c3, %c0_22] : memref<10x32xf32, #tpu.memory_space<vmem>>, vector<1x32xf32>
    %47 = arith.truncf %44 : vector<64x16xf32> to vector<64x16xbf16>
    %cst_23 = arith.constant dense<0.000000e+00> : vector<64x32xf32>
    %48 = tpu.matmul %47, %45, %cst_23 {dimension_numbers = #tpu.dot_dimension_numbers<[1], [0], [0], [1], [0, 0, 1, 1], [], []>} : vector<64x16xbf16>, vector<16x32xbf16>, vector<64x32xf32> -> vector<64x32xf32>
    %49 = vector.broadcast %46 : vector<1x32xf32> to vector<64x32xf32>
    %50 = arith.addf %48, %49 : vector<64x32xf32>
    %cst_24 = arith.constant 5.000000e-01 : f32
    %51 = vector.broadcast %cst_24 : f32 to vector<64x32xf32>
    %52 = arith.mulf %51, %50 : vector<64x32xf32>
    %cst_25 = arith.constant 0.707106769 : f32
    %53 = vector.broadcast %cst_25 : f32 to vector<64x32xf32>
    %54 = arith.mulf %50, %53 : vector<64x32xf32>
    %55 = math.erf %54 : vector<64x32xf32>
    %cst_26 = arith.constant 1.000000e+00 : f32
    %56 = vector.broadcast %cst_26 : f32 to vector<64x32xf32>
    %57 = arith.addf %56, %55 : vector<64x32xf32>
    %58 = arith.mulf %52, %57 : vector<64x32xf32>
    %c96 = arith.constant 96 : index
    %c0_27 = arith.constant 0 : index
    %59 = vector.load %arg2[%c96, %c0_27] : memref<288x32xbf16, #tpu.memory_space<vmem>>, vector<16x16xbf16>
    %c4 = arith.constant 4 : index
    %c0_28 = arith.constant 0 : index
    %60 = vector.load %arg3[%c4, %c0_28] : memref<10x32xf32, #tpu.memory_space<vmem>>, vector<1x16xf32>
    %61 = arith.truncf %33 : vector<64x16xf32> to vector<64x16xbf16>
    %cst_29 = arith.constant dense<0.000000e+00> : vector<64x16xf32>
    %62 = tpu.matmul %61, %59, %cst_29 {dimension_numbers = #tpu.dot_dimension_numbers<[1], [0], [0], [1], [0, 0, 1, 1], [], []>} : vector<64x16xbf16>, vector<16x16xbf16>, vector<64x16xf32> -> vector<64x16xf32>
    %63 = vector.broadcast %60 : vector<1x16xf32> to vector<64x16xf32>
    %64 = arith.addf %62, %63 : vector<64x16xf32>
    %cst_30 = arith.constant 0.000000e+00 : f32
    %65 = vector.broadcast %cst_30 : f32 to vector<64x16xf32>
    %66 = arith.cmpf ogt, %64, %65 : vector<64x16xf32>
    %cst_31 = arith.constant 0.00999999977 : f32
    %67 = vector.broadcast %cst_31 : f32 to vector<64x16xf32>
    %68 = arith.mulf %67, %64 : vector<64x16xf32>
    %69 = arith.select %66, %64, %68 : vector<64x16xi1>, vector<64x16xf32>
    %c112 = arith.constant 112 : index
    %c0_32 = arith.constant 0 : index
    %70 = vector.load %arg2[%c112, %c0_32] : memref<288x32xbf16, #tpu.memory_space<vmem>>, vector<16x32xbf16>
    %c5 = arith.constant 5 : index
    %c0_33 = arith.constant 0 : index
    %71 = vector.load %arg3[%c5, %c0_33] : memref<10x32xf32, #tpu.memory_space<vmem>>, vector<1x32xf32>
    %72 = arith.truncf %69 : vector<64x16xf32> to vector<64x16xbf16>
    %cst_34 = arith.constant dense<0.000000e+00> : vector<64x32xf32>
    %73 = tpu.matmul %72, %70, %cst_34 {dimension_numbers = #tpu.dot_dimension_numbers<[1], [0], [0], [1], [0, 0, 1, 1], [], []>} : vector<64x16xbf16>, vector<16x32xbf16>, vector<64x32xf32> -> vector<64x32xf32>
    %74 = vector.broadcast %71 : vector<1x32xf32> to vector<64x32xf32>
    %75 = arith.addf %73, %74 : vector<64x32xf32>
    %cst_35 = arith.constant 5.000000e-01 : f32
    %76 = vector.broadcast %cst_35 : f32 to vector<64x32xf32>
    %77 = arith.mulf %76, %75 : vector<64x32xf32>
    %cst_36 = arith.constant 0.707106769 : f32
    %78 = vector.broadcast %cst_36 : f32 to vector<64x32xf32>
    %79 = arith.mulf %75, %78 : vector<64x32xf32>
    %80 = math.erf %79 : vector<64x32xf32>
    %cst_37 = arith.constant 1.000000e+00 : f32
    %81 = vector.broadcast %cst_37 : f32 to vector<64x32xf32>
    %82 = arith.addf %81, %80 : vector<64x32xf32>
    %83 = arith.mulf %77, %82 : vector<64x32xf32>
    %84 = arith.truncf %58 : vector<64x32xf32> to vector<64x32xbf16>
    %85 = vector.shape_cast %84 : vector<64x32xbf16> to vector<4x16x32xbf16>
    %86 = arith.truncf %83 : vector<64x32xf32> to vector<64x32xbf16>
    %87 = vector.shape_cast %86 : vector<64x32xbf16> to vector<4x16x32xbf16>
    "tpu.trace_start"() <{level = 10 : i32, message = "bqd,bkd->bqk"}> : () -> ()
    %cst_38 = arith.constant dense<0.000000e+00> : vector<4x8x16xf32>
    %88 = tpu.matmul %32, %85, %cst_38 {dimension_numbers = #tpu.dot_dimension_numbers<[2], [2], [1], [1], [0, 0, 0, 1, 1, 1], [0], [0]>} : vector<4x8x32xbf16>, vector<4x16x32xbf16>, vector<4x8x16xf32> -> vector<4x8x16xf32>
    "tpu.trace_stop"() : () -> ()
    %cst_39 = arith.constant dense<0xFF800000> : vector<4x8xf32>
    %89 = vector.multi_reduction <maximumf>, %88, %cst_39 [2] : vector<4x8x16xf32> to vector<4x8xf32>
    %90 = vector.shape_cast %89 : vector<4x8xf32> to vector<4x8x1xf32>
    %91 = vector.broadcast %90 : vector<4x8x1xf32> to vector<4x8x16xf32>
    %92 = arith.subf %88, %91 : vector<4x8x16xf32>
    %93 = math.exp %92 : vector<4x8x16xf32>
    %cst_40 = arith.constant dense<0.000000e+00> : vector<4x8xf32>
    %94 = vector.multi_reduction <add>, %93, %cst_40 [2] : vector<4x8x16xf32> to vector<4x8xf32>
    %95 = vector.shape_cast %94 : vector<4x8xf32> to vector<4x8x1xf32>
    %96 = tpu.reciprocal %95 {approx = true} : vector<4x8x1xf32> -> vector<4x8x1xf32>
    %97 = vector.broadcast %96 : vector<4x8x1xf32> to vector<4x8x16xf32>
    %98 = arith.mulf %93, %97 : vector<4x8x16xf32>
    %99 = arith.truncf %98 : vector<4x8x16xf32> to vector<4x8x16xbf16>
    "tpu.trace_start"() <{level = 10 : i32, message = "bqk,bkd->bqd"}> : () -> ()
    %cst_41 = arith.constant dense<0.000000e+00> : vector<4x8x32xf32>
    %100 = tpu.matmul %99, %87, %cst_41 {dimension_numbers = #tpu.dot_dimension_numbers<[2], [1], [1], [2], [0, 0, 0, 1, 1, 2], [0], [0]>} : vector<4x8x16xbf16>, vector<4x16x32xbf16>, vector<4x8x32xf32> -> vector<4x8x32xf32>
    "tpu.trace_stop"() : () -> ()
    %101 = vector.shape_cast %100 : vector<4x8x32xf32> to vector<32x32xf32>
    %c128 = arith.constant 128 : index
    %c0_42 = arith.constant 0 : index
    %102 = vector.load %arg2[%c128, %c0_42] : memref<288x32xbf16, #tpu.memory_space<vmem>>, vector<32x32xbf16>
    %c6 = arith.constant 6 : index
    %c0_43 = arith.constant 0 : index
    %103 = vector.load %arg3[%c6, %c0_43] : memref<10x32xf32, #tpu.memory_space<vmem>>, vector<1x32xf32>
    %104 = arith.truncf %101 : vector<32x32xf32> to vector<32x32xbf16>
    %cst_44 = arith.constant dense<0.000000e+00> : vector<32x32xf32>
    %105 = tpu.matmul %104, %102, %cst_44 {dimension_numbers = #tpu.dot_dimension_numbers<[1], [0], [0], [1], [0, 0, 1, 1], [], []>} : vector<32x32xbf16>, vector<32x32xbf16>, vector<32x32xf32> -> vector<32x32xf32>
    %106 = vector.broadcast %103 : vector<1x32xf32> to vector<32x32xf32>
    %107 = arith.addf %105, %106 : vector<32x32xf32>
    %cst_45 = arith.constant 0.000000e+00 : f32
    %108 = vector.broadcast %cst_45 : f32 to vector<32x32xf32>
    %109 = arith.cmpf ogt, %107, %108 : vector<32x32xf32>
    %cst_46 = arith.constant 0.00999999977 : f32
    %110 = vector.broadcast %cst_46 : f32 to vector<32x32xf32>
    %111 = arith.mulf %110, %107 : vector<32x32xf32>
    %112 = arith.select %109, %107, %111 : vector<32x32xi1>, vector<32x32xf32>
    %c160 = arith.constant 160 : index
    %c0_47 = arith.constant 0 : index
    %113 = vector.load %arg2[%c160, %c0_47] : memref<288x32xbf16, #tpu.memory_space<vmem>>, vector<32x32xbf16>
    %c7 = arith.constant 7 : index
    %c0_48 = arith.constant 0 : index
    %114 = vector.load %arg3[%c7, %c0_48] : memref<10x32xf32, #tpu.memory_space<vmem>>, vector<1x32xf32>
    %115 = arith.truncf %112 : vector<32x32xf32> to vector<32x32xbf16>
    %cst_49 = arith.constant dense<0.000000e+00> : vector<32x32xf32>
    %116 = tpu.matmul %115, %113, %cst_49 {dimension_numbers = #tpu.dot_dimension_numbers<[1], [0], [0], [1], [0, 0, 1, 1], [], []>} : vector<32x32xbf16>, vector<32x32xbf16>, vector<32x32xf32> -> vector<32x32xf32>
    %117 = vector.broadcast %114 : vector<1x32xf32> to vector<32x32xf32>
    %118 = arith.addf %116, %117 : vector<32x32xf32>
    %cst_50 = arith.constant 5.000000e-01 : f32
    %119 = vector.broadcast %cst_50 : f32 to vector<32x32xf32>
    %120 = arith.mulf %119, %118 : vector<32x32xf32>
    %cst_51 = arith.constant 0.707106769 : f32
    %121 = vector.broadcast %cst_51 : f32 to vector<32x32xf32>
    %122 = arith.mulf %118, %121 : vector<32x32xf32>
    %123 = math.erf %122 : vector<32x32xf32>
    %cst_52 = arith.constant 1.000000e+00 : f32
    %124 = vector.broadcast %cst_52 : f32 to vector<32x32xf32>
    %125 = arith.addf %124, %123 : vector<32x32xf32>
    %126 = arith.mulf %120, %125 : vector<32x32xf32>
    %127 = arith.truncf %126 : vector<32x32xf32> to vector<32x32xbf16>
    %128 = vector.shape_cast %127 : vector<32x32xbf16> to vector<2x16x32xbf16>
    %c192 = arith.constant 192 : index
    %c0_53 = arith.constant 0 : index
    %129 = vector.load %arg2[%c192, %c0_53] : memref<288x32xbf16, #tpu.memory_space<vmem>>, vector<64x32xbf16>
    %130 = vector.shape_cast %129 : vector<64x32xbf16> to vector<2x32x32xbf16>
    "tpu.trace_start"() <{level = 10 : i32, message = "hmc,hcd->hmd"}> : () -> ()
    %cst_54 = arith.constant dense<0.000000e+00> : vector<2x16x32xf32>
    %131 = tpu.matmul %128, %130, %cst_54 {dimension_numbers = #tpu.dot_dimension_numbers<[2], [1], [1], [2], [0, 0, 0, 1, 1, 2], [0], [0]>} : vector<2x16x32xbf16>, vector<2x32x32xbf16>, vector<2x16x32xf32> -> vector<2x16x32xf32>
    "tpu.trace_stop"() : () -> ()
    %cst_55 = arith.constant dense<0.000000e+00> : vector<16x32xf32>
    %132 = vector.multi_reduction <add>, %131, %cst_55 [0] : vector<2x16x32xf32> to vector<16x32xf32>
    %c8 = arith.constant 8 : index
    %c0_56 = arith.constant 0 : index
    %133 = vector.load %arg3[%c8, %c0_56] : memref<10x32xf32, #tpu.memory_space<vmem>>, vector<1x32xf32>
    %134 = vector.broadcast %133 : vector<1x32xf32> to vector<16x32xf32>
    %135 = arith.addf %132, %134 : vector<16x32xf32>
    %cst_57 = arith.constant 0.000000e+00 : f32
    %136 = vector.broadcast %cst_57 : f32 to vector<16x32xf32>
    %137 = arith.cmpf ogt, %135, %136 : vector<16x32xf32>
    %cst_58 = arith.constant 0.00999999977 : f32
    %138 = vector.broadcast %cst_58 : f32 to vector<16x32xf32>
    %139 = arith.mulf %138, %135 : vector<16x32xf32>
    %140 = arith.select %137, %135, %139 : vector<16x32xi1>, vector<16x32xf32>
    %c256 = arith.constant 256 : index
    %c0_59 = arith.constant 0 : index
    %141 = vector.load %arg2[%c256, %c0_59] : memref<288x32xbf16, #tpu.memory_space<vmem>>, vector<32x32xbf16>
    %c9 = arith.constant 9 : index
    %c0_60 = arith.constant 0 : index
    %142 = vector.load %arg3[%c9, %c0_60] : memref<10x32xf32, #tpu.memory_space<vmem>>, vector<1x32xf32>
    %143 = arith.truncf %140 : vector<16x32xf32> to vector<16x32xbf16>
    %cst_61 = arith.constant dense<0.000000e+00> : vector<16x32xf32>
    %144 = tpu.matmul %143, %141, %cst_61 {dimension_numbers = #tpu.dot_dimension_numbers<[1], [0], [0], [1], [0, 0, 1, 1], [], []>} : vector<16x32xbf16>, vector<32x32xbf16>, vector<16x32xf32> -> vector<16x32xf32>
    %145 = vector.broadcast %142 : vector<1x32xf32> to vector<16x32xf32>
    %146 = arith.addf %144, %145 : vector<16x32xf32>
    %cst_62 = arith.constant 0.000000e+00 : f32
    %147 = vector.broadcast %cst_62 : f32 to vector<16x32xf32>
    %148 = arith.cmpf ogt, %146, %147 : vector<16x32xf32>
    %cst_63 = arith.constant 0.00999999977 : f32
    %149 = vector.broadcast %cst_63 : f32 to vector<16x32xf32>
    %150 = arith.mulf %149, %146 : vector<16x32xf32>
    %151 = arith.select %148, %146, %150 : vector<16x32xi1>, vector<16x32xf32>
    %152 = vector.shape_cast %151 : vector<16x32xf32> to vector<2x8x32xf32>
    %c0_64 = arith.constant 0 : index
    %c0_65 = arith.constant 0 : index
    %c0_66 = arith.constant 0 : index
    %153 = vector.load %arg4[%c0_64, %c0_65, %c0_66] : memref<2x8x32xf32, #tpu.memory_space<vmem>>, vector<2x8x32xf32>
    tpu.vector_store %arg4[%c0_64, %c0_65, %c0_66], %152 {strides = array<i32>} : memref<2x8x32xf32, #tpu.memory_space<vmem>>, vector<2x8x32xf32>,
    return
  }
}

</mosaic_0001>

<bundles_post_ra>
// kernel: multi_heads_forward.1
= control target key start
LH: loop header
LB: loop body
LE: loop exit
PB: predicated region body
PF: predicated region fallthrough
CT: control target
= control target key end

     0   :  { %v1875_v1 = vmov 0.0   ;;  %vm1876_vm0 = vmmov 0   ;;  %vm43_vm1 = vcmask 261120   ;;  %vm203_vm2 = vcmask 130048   ;;  %s2144_s0 = inlined_call_operand.vmem [shape: f32[16,32], index: 0, kind: input, shape index: {}]   ;;  %s2145_s1 = inlined_call_operand.vmem [shape: f32[64,16], index: 1, kind: input, shape index: {}]   ;;  %s2146_s2 = inlined_call_operand.vmem [shape: bf16[288,32], index: 2, kind: input, shape index: {}]   ;;  %s2147_s3 = inlined_call_operand.vmem [shape: f32[10,32], index: 3, kind: input, shape index: {}]   ;;  %s2148_s4 = inlined_call_operand.hbm [shape: f32[2,8,32], index: 4, kind: output, shape index: {}]  }
   0x1   :  { %v1773_v0 = vld [vmem:[%s2146_s2] sm:$0xff]   ;;  %1624 = vmatprep.subr.bf16.mxu0 %v1875_v1  ;;  %v1774_v2 = vld [vmem:[%s2146_s2 + $0x8] sm:$0xff]   ;;  %1632 = vmatprep.subr.bf16.mxu1 %v1875_v1  ;;  %v180_v10 = vld [vmem:[%s2145_s1 + $0x10] sm:$0xff] }
   0x2   :  { %1625 = vmatpush3.bf16.msra.mxu0 %v1773_v0  ;;  %1628 = vmatprep.mubr.msk.bf16.mxu0 %vm1876_vm0, %v1875_v1  ;;  %v19_v3 = vld [vmem:[%s2144_s0] sm:$0xff]  ;;  %v20_v4 = vld [vmem:[%s2144_s0 + $0x8] sm:$0xff]  ;;  %v181_v11 = vld [vmem:[%s2145_s1 + $0x18] sm:$0xff] }
   0x3   :  { %1626 = vmatprep.subr.bf16.mxu0 %v1875_v1  ;;  %v1775_v5 = vld [vmem:[%s2146_s2 + $0x20] sm:$0xff]   ;;  %1636 = vmatprep.mubr.msk.bf16.mxu1 %vm1876_vm0, %v1875_v1  ;;  %v179_v7 = vld [vmem:[%s2145_s1 + $0x8] sm:$0xff]  ;;  %v26_v8 = vpack.c.bf16 %v20_v4, %v19_v3  ;;  %v190_v14 = vpack.c.bf16 %v181_v11, %v180_v10 }
   0x4   :  { %v178_v6 = vld [vmem:[%s2145_s1] sm:$0xff]  ;;  %v183_v13 = vld [vmem:[%s2145_s1 + $0x28] sm:$0xff] }
   0x5   :  { %v189_v9 = vpack.c.bf16 %v179_v7, %v178_v6  ;;  %v182_v12 = vld [vmem:[%s2145_s1 + $0x20] sm:$0xff] }
   0x6   :  { %1627 = vmatpush3.bf16.msra.mxu0 %v1774_v2  ;;  %v191_v15 = vpack.c.bf16 %v183_v13, %v182_v12 }
   0x7   :  { %1640 = vmatprep.subr.bf16.mxu0 %v1775_v5 }
   0x9   :  { %1629 = vmatmul.mubr.msk.bf16.vlgmr.msra.gmra.mrb[0].mxu0 %vm43_vm1, %v26_v8 }
   0xa   :  { %1641 = vmatpush3.bf16.msra.mxu0 %v1775_v5  ;;  %1642 = vmatprep.mubr.msk.bf16.mxu0 %vm203_vm2, %v189_v9 }
   0xb   :  { %9 = vsyncpa [#allocation3], 0  ;;  %v184_v16 = vld [vmem:[%s2145_s1 + $0x30] sm:$0xff]  ;;  %v185_v17 = vld [vmem:[%s2145_s1 + $0x38] sm:$0xff]  ;;  %s1877_s7 = smov [#allocation2]  }
   0xc   :  { %v192_v18 = vpack.c.bf16 %v185_v17, %v184_v16  ;;  %v1776_v19 = vld [vmem:[%s2146_s2 + $0x10] sm:$0xff]   ;;  %v1777_v21 = vld [vmem:[%s2146_s2 + $0x18] sm:$0xff]   ;;  %v1779_v22 = vld [vmem:[%s2146_s2 + $0x28] sm:$0xff]   ;;  %s1489_s8 = sshll.u32 %s1877_s7, 4  ;;  %s1490_s8 = int_to_ptr.vmem [resolvable:$true] %s1489_s8 }
   0xd   :  { %v1778_v20 = vld [vmem:[%s2146_s2 + $0x30] sm:$0xff]   ;;  %1633 = vmatpush3.bf16.msra.mxu1 %v1776_v19  ;;  %v1500_v23 = vld [vmem:[%s2147_s3] ss:$0 sm:$0xff]  ;;  %v1510_v32 = vld [vmem:[%s2147_s3 + $0x2] ss:$0 sm:$0xff]  ;;  %p1856_p1 = scmp.lt.s32.totalorder %s1490_s8, %s1490_s8 }
   0xe   :  { %1660 = vmatprep.subr.bf16.mxu0 %v1778_v20  ;;  %1634 = vmatprep.subr.bf16.mxu1 %v1875_v1  ;;  %v1522_v12 = vld [vmem:[%s2147_s3 + $0x4] ss:$0 sm:$0xff] }
  0x11   :  { %1643 = vmatmul.mubr.msk.bf16.vlgmr.msra.gmra.mrb[4].mxu0 %vm203_vm2, %v190_v14  ;;  %1635 = vmatpush3.bf16.msra.mxu1 %v1777_v21 }
  0x12   :  { %1646 = vmatprep.mubr.msk.bf16.mxu0 %vm203_vm2, %v191_v15  ;;  %1661 = vmatpush3.bf16.msra.mxu0 %v1778_v20  ;;  %v1780_v20 = vld [vmem:[%s2146_s2 + $0x38] sm:$0xff]  }
  0x13   :  { %1680 = vmatprep.subr.bf16.mxu0 %v1875_v1  ;;  %1650 = vmatprep.subr.bf16.mxu1 %v1779_v22 }
  0x19   :  { %1647 = vmatmul.mubr.msk.bf16.gmra.mrb[8].mxu0 %vm203_vm2, %v192_v18 }
  0x1a   :  { %1662 = vmatprep.mubr.msk.bf16.mxu0 %vm203_vm2, %v189_v9 }
  0x21   :  { %1663 = vmatmul.mubr.msk.bf16.vlgmr.msra.gmra.mrb[12].mxu0 %vm203_vm2, %v190_v14 }
  0x22   :  { %1666 = vmatprep.mubr.msk.bf16.mxu0 %vm203_vm2, %v191_v15 }
  0x29   :  { %1667 = vmatmul.mubr.msk.bf16.gmra.mrb[16].mxu0 %vm203_vm2, %v192_v18 }
  0x2a   :  { %1682 = vmatprep.mubr.msk.bf16.mxu0 %vm1876_vm0, %v1875_v1 }
  0xdc   :  { %v81_v24 = vpop.f32.mrb[0].mxu0 }
  0xdd   :  { %v82_v25 = vadd.f32 %v1500_v23, %v81_v24  ;;  %v1630_v26 = vpop.f32.mrb[1].mxu0 }
  0xde   :  { %v84_v27 = vpop.f32.mrb[2].mxu0 }
  0xdf   :  { %v90_v28 = vmul.f32 0.01, %v82_v25  ;;  %v85_v29 = vadd.f32 %v1500_v23, %v84_v27  ;;  %v1631_v30 = vpop.f32.mrb[3].mxu0  ;;  %vm88_vm3 = vcmp.gt.f32.partialorder %v82_v25, 0.0 }
  0xe1   :  { %vm89_vm4 = vcmp.gt.f32.partialorder %v85_v29, 0.0  ;;  %v91_v31 = vmul.f32 0.01, %v85_v29  ;;  %v92_v33 = vsel %vm88_vm3, %v82_v25, %v90_v28 }
  0xe3   :  { %v93_v34 = vsel %vm89_vm4, %v85_v29, %v91_v31 }
  0xe4   :  { %v99_v35 = vpack.c.bf16 %v93_v34, %v92_v33  ;;  %v1644_v36 = vpop.f32.mrb[4].mxu0 }
  0xe5   :  { %v259_v37 = vadd.f32 %v1644_v36, %v1510_v32  ;;  %v250_v38 = vpop.f32.mrb[5].mxu0 }
  0xe6   :  { %v251_v39 = vadd.f32 %v1510_v32, %v250_v38  ;;  %1637 = vmatmul.mubr.msk.bf16.vlgmr.msra.gmra.mrb[0].mxu1 %vm43_vm1, %v99_v35  ;;  %v1645_v40 = vpop.f32.mrb[6].mxu0 }
  0xe7   :  { %v291_v41 = vmul.f32 0.01, %v259_v37  ;;  %v262_v42 = vadd.f32 %v1645_v40, %v1510_v32  ;;  %v253_v43 = vpop.f32.mrb[7].mxu0  ;;  %1651 = vmatpush3.bf16.msra.mxu1 %v1779_v22  ;;  %vm283_vm5 = vcmp.gt.f32.partialorder %v259_v37, 0.0 }
  0xe8   :  { %v289_v44 = vmul.f32 0.01, %v251_v39  ;;  %v254_v45 = vadd.f32 %v1510_v32, %v253_v43  ;;  %vm281_vm6 = vcmp.gt.f32.partialorder %v251_v39, 0.0  ;;  %1670 = vmatprep.subr.bf16.mxu1 %v1780_v20 }
  0xe9   :  { %vm284_vm7 = vcmp.gt.f32.partialorder %v262_v42, 0.0  ;;  %v292_v46 = vmul.f32 0.01, %v262_v42  ;;  %v299_v48 = vsel %vm283_vm5, %v259_v37, %v291_v41 }
  0xea   :  { %vm282_vm8 = vcmp.gt.f32.partialorder %v254_v45, 0.0  ;;  %v290_v47 = vmul.f32 0.01, %v254_v45  ;;  %v297_v50 = vsel %vm281_vm6, %v251_v39, %v289_v44 }
  0xeb   :  { %v300_v49 = vsel %vm284_vm7, %v262_v42, %v292_v46 }
  0xec   :  { %v309_v51 = vpack.c.bf16 %v300_v49, %v299_v48  ;;  %v298_v52 = vsel %vm282_vm8, %v254_v45, %v290_v47  ;;  %v1648_v53 = vpop.f32.mrb[8].mxu0  ;;  %v1504_v49 = vld [vmem:[%s2147_s3 + $0x1] ss:$0 sm:$0xff] }
  0xed   :  { %v308_v54 = vpack.c.bf16 %v298_v52, %v297_v50  ;;  %v275_v55 = vadd.f32 %v1648_v53, %v1510_v32  ;;  %v266_v56 = vpop.f32.mrb[9].mxu0 }
  0xee   :  { %v267_v57 = vadd.f32 %v1510_v32, %v266_v56  ;;  %v1649_v58 = vpop.f32.mrb[10].mxu0 }
  0xef   :  { %v295_v59 = vmul.f32 0.01, %v275_v55  ;;  %v278_v60 = vadd.f32 %v1649_v58, %v1510_v32  ;;  %v269_v61 = vpop.f32.mrb[11].mxu0  ;;  %1652 = vmatprep.mubr.msk.bf16.mxu1 %vm203_vm2, %v308_v54  ;;  %vm287_vm9 = vcmp.gt.f32.partialorder %v275_v55, 0.0  ;;  %v1516_v54 = vld [vmem:[%s2147_s3 + $0x3] ss:$0 sm:$0xff] }
  0xf0   :  { %v293_v62 = vmul.f32 0.01, %v267_v57  ;;  %v270_v63 = vadd.f32 %v1510_v32, %v269_v61  ;;  %1653 = vmatmul.mubr.msk.bf16.vlgmr.msra.gmra.mrb[4].mxu1 %vm203_vm2, %v309_v51  ;;  %vm285_vm10 = vcmp.gt.f32.partialorder %v267_v57, 0.0 }
  0xf1   :  { %vm288_vm11 = vcmp.gt.f32.partialorder %v278_v60, 0.0  ;;  %v296_v0 = vmul.f32 0.01, %v278_v60  ;;  %v303_v3 = vsel %vm287_vm9, %v275_v55, %v295_v59  ;;  %1671 = vmatpush3.bf16.msra.mxu1 %v1780_v20 }
  0xf2   :  { %vm286_vm12 = vcmp.gt.f32.partialorder %v270_v63, 0.0  ;;  %v294_v2 = vmul.f32 0.01, %v270_v63  ;;  %v301_v5 = vsel %vm285_vm10, %v267_v57, %v293_v62  ;;  %1686 = vmatprep.subr.bf16.mxu1 %v1875_v1 }
  0xf3   :  { %v304_v4 = vsel %vm288_vm11, %v278_v60, %v296_v0 }
  0xf4   :  { %v311_v6 = vpack.c.bf16 %v304_v4, %v303_v3  ;;  %v302_v7 = vsel %vm286_vm12, %v270_v63, %v294_v2  ;;  %v1664_v9 = vpop.f32.mrb[12].mxu0 }
  0xf5   :  { %v310_v8 = vpack.c.bf16 %v302_v7, %v301_v5  ;;  %v486_v10 = vpop.f32.mrb[13].mxu0  ;;  %v495_v16 = vadd.f32 %v1664_v9, %v1522_v12 }
  0xf6   :  { %v1665_v11 = vpop.f32.mrb[14].mxu0  ;;  %v487_v14 = vadd.f32 %v1522_v12, %v486_v10 }
  0xf7   :  { %1656 = vmatprep.mubr.msk.bf16.mxu1 %vm203_vm2, %v310_v8  ;;  %v489_v13 = vpop.f32.mrb[15].mxu0  ;;  %v498_v17 = vadd.f32 %v1665_v11, %v1522_v12  ;;  %v527_v21 = vmul.f32 0.01, %v495_v16  ;;  %vm519_vm15 = vcmp.gt.f32.partialorder %v495_v16, 0.0 }
  0xf8   :  { %1657 = vmatmul.mubr.msk.bf16.gmra.mrb[8].mxu1 %vm203_vm2, %v311_v6  ;;  %v490_v15 = vadd.f32 %v1522_v12, %v489_v13  ;;  %v525_v18 = vmul.f32 0.01, %v487_v14  ;;  %vm517_vm13 = vcmp.gt.f32.partialorder %v487_v14, 0.0 }
  0xf9   :  { %v528_v22 = vmul.f32 0.01, %v498_v17  ;;  %vm520_vm3 = vcmp.gt.f32.partialorder %v498_v17, 0.0  ;;  %v535_v26 = vsel %vm519_vm15, %v495_v16, %v527_v21 }
  0xfa   :  { %v526_v19 = vmul.f32 0.01, %v490_v15  ;;  %vm518_vm14 = vcmp.gt.f32.partialorder %v490_v15, 0.0  ;;  %v533_v23 = vsel %vm517_vm13, %v487_v14, %v525_v18 }
  0xfb   :  { %v536_v27 = vsel %vm520_vm3, %v498_v17, %v528_v22 }
  0xfc   :  { %v534_v24 = vsel %vm518_vm14, %v490_v15, %v526_v19  ;;  %v1668_v25 = vpop.f32.mrb[16].mxu0  ;;  %v545_v30 = vpack.c.bf16 %v536_v27, %v535_v26 }
  0xfd   :  { %v544_v28 = vpack.c.bf16 %v534_v24, %v533_v23  ;;  %v502_v29 = vpop.f32.mrb[17].mxu0  ;;  %v511_v35 = vadd.f32 %v1668_v25, %v1522_v12 }
  0xfe   :  { %v1669_v31 = vpop.f32.mrb[18].mxu0  ;;  %v503_v33 = vadd.f32 %v1522_v12, %v502_v29 }
  0xff   :  { %v505_v32 = vpop.f32.mrb[19].mxu0  ;;  %1672 = vmatprep.mubr.msk.bf16.mxu1 %vm203_vm2, %v544_v28  ;;  %v514_v36 = vadd.f32 %v1669_v31, %v1522_v12  ;;  %v531_v39 = vmul.f32 0.01, %v511_v35  ;;  %vm523_vm6 = vcmp.gt.f32.partialorder %v511_v35, 0.0 }
 0x100   :  { %v506_v34 = vadd.f32 %v1522_v12, %v505_v32  ;;  %1673 = vmatmul.mubr.msk.bf16.vlgmr.msra.gmra.mrb[12].mxu1 %vm203_vm2, %v545_v30  ;;  %v529_v37 = vmul.f32 0.01, %v503_v33  ;;  %vm521_vm4 = vcmp.gt.f32.partialorder %v503_v33, 0.0 }
 0x101   :  { %v532_v40 = vmul.f32 0.01, %v514_v36  ;;  %vm524_vm7 = vcmp.gt.f32.partialorder %v514_v36, 0.0  ;;  %v539_v43 = vsel %vm523_vm6, %v511_v35, %v531_v39 }
 0x102   :  { %v530_v38 = vmul.f32 0.01, %v506_v34  ;;  %vm522_vm5 = vcmp.gt.f32.partialorder %v506_v34, 0.0  ;;  %v537_v41 = vsel %vm521_vm4, %v503_v33, %v529_v37 }
 0x103   :  { %v540_v44 = vsel %vm524_vm7, %v514_v36, %v532_v40 }
 0x104   :  { %v538_v42 = vsel %vm522_vm5, %v506_v34, %v530_v38  ;;  %v547_v46 = vpack.c.bf16 %v540_v44, %v539_v43 }
 0x105   :  { %v546_v45 = vpack.c.bf16 %v538_v42, %v537_v41 }
 0x107   :  { %1676 = vmatprep.mubr.msk.bf16.mxu1 %vm203_vm2, %v546_v45 }
 0x108   :  { %1677 = vmatmul.mubr.msk.bf16.gmra.mrb[16].mxu1 %vm203_vm2, %v547_v46 }
 0x109   :  { %1688 = vmatprep.mubr.msk.bf16.mxu1 %vm1876_vm0, %v1875_v1 }
 0x1b9   :  { %v153_v47 = vpop.f32.mrb[0].mxu1 }
 0x1ba   :  { %v1638_v48 = vpop.f32.mrb[1].mxu1  ;;  %v154_v52 = vadd.f32 %v1504_v49, %v153_v47 }
 0x1bb   :  { %v156_v50 = vpop.f32.mrb[2].mxu1 }
 0x1bc   :  { %v1639_v51 = vpop.f32.mrb[3].mxu1  ;;  %v157_v53 = vadd.f32 %v1504_v49, %v156_v50  ;;  %v162_v55 = vmul.f32 0.70710677, %v154_v52  ;;  %v160_v37 = vmul.f32 0.5, %v154_v52 }
 0x1be   :  { %v163_v56 = vmul.f32 0.70710677, %v157_v53  ;;  %1791 = verf.f32 %v162_v55  ;;  %v161_v34 = vmul.f32 0.5, %v157_v53 }
 0x1c0   :  { %1793 = verf.f32 %v163_v56 }
 0x1c3   :  { %v1654_v57 = vpop.f32.mrb[4].mxu1 }
 0x1c4   :  { %v377_v58 = vadd.f32 %v1654_v57, %v1516_v54  ;;  %v368_v59 = vpop.f32.mrb[5].mxu1 }
 0x1c5   :  { %v369_v60 = vadd.f32 %v1516_v54, %v368_v59  ;;  %v1655_v61 = vpop.f32.mrb[6].mxu1 }
 0x1c6   :  { %v409_v62 = vmul.f32 0.70710677, %v377_v58  ;;  %v380_v63 = vadd.f32 %v1655_v61, %v1516_v54  ;;  %v371_v0 = vpop.f32.mrb[7].mxu1  ;;  %v401_v27 = vmul.f32 0.5, %v377_v58 }
 0x1c7   :  { %v407_v2 = vmul.f32 0.70710677, %v369_v60  ;;  %v372_v3 = vadd.f32 %v1516_v54, %v371_v0  ;;  %v399_v31 = vmul.f32 0.5, %v369_v60 }
 0x1c8   :  { %1795 = verf.f32 %v409_v62  ;;  %v410_v4 = vmul.f32 0.70710677, %v380_v63  ;;  %v1792_v15 = vpop.eup %1791  ;;  %v402_v28 = vmul.f32 0.5, %v380_v63 }
 0x1c9   :  { %1797 = verf.f32 %v407_v2  ;;  %v408_v5 = vmul.f32 0.70710677, %v372_v3  ;;  %v166_v30 = vadd.f32 1.0, %v1792_v15  ;;  %v400_v32 = vmul.f32 0.5, %v372_v3 }
 0x1ca   :  { %1799 = verf.f32 %v410_v4  ;;  %v1794_v18 = vpop.eup %1793 }
 0x1cb   :  { %1801 = verf.f32 %v408_v5  ;;  %v1658_v6 = vpop.f32.mrb[8].mxu1  ;;  %v167_v26 = vadd.f32 1.0, %v1794_v18  ;;  %v168_v43 = vmul.f32 %v166_v30, %v160_v37 }
 0x1cc   :  { %v393_v7 = vadd.f32 %v1658_v6, %v1516_v54  ;;  %v384_v8 = vpop.f32.mrb[9].mxu1 }
 0x1cd   :  { %v385_v9 = vadd.f32 %v1516_v54, %v384_v8  ;;  %v1659_v10 = vpop.f32.mrb[10].mxu1  ;;  %v169_v40 = vmul.f32 %v167_v26, %v161_v34  ;;  %v170_v56 = vmul.f32 0.17677669, %v168_v43 }
 0x1ce   :  { %v413_v11 = vmul.f32 0.70710677, %v393_v7  ;;  %v396_v12 = vadd.f32 %v1659_v10, %v1516_v54  ;;  %v387_v13 = vpop.f32.mrb[11].mxu1  ;;  %v405_v49 = vmul.f32 0.5, %v393_v7  ;;  %v1528_v7 = vld [vmem:[%s2147_s3 + $0x5] ss:$0 sm:$0xff] }
 0x1cf   :  { %v411_v14 = vmul.f32 0.70710677, %v385_v9  ;;  %v388_v17 = vadd.f32 %v1516_v54, %v387_v13  ;;  %v171_v51 = vmul.f32 0.17677669, %v169_v40  ;;  %v403_v57 = vmul.f32 0.5, %v385_v9 }
 0x1d0   :  { %1803 = verf.f32 %v413_v11  ;;  %v414_v16 = vmul.f32 0.70710677, %v396_v12  ;;  %v406_v54 = vmul.f32 0.5, %v396_v12  ;;  %v1563_v3 = vpack.c.bf16 %v170_v56, %v170_v56 }
 0x1d1   :  { %1805 = verf.f32 %v411_v14  ;;  %v412_v20 = vmul.f32 0.70710677, %v388_v17  ;;  %v404_v60 = vmul.f32 0.5, %v388_v17  ;;  %v1564_v62 = vpack.c.bf16 %v171_v51, %v171_v51 }
 0x1d2   :  { %v1796_v19 = vpop.eup %1795  ;;  %1807 = verf.f32 %v414_v16 }
 0x1d3   :  { %v1798_v21 = vpop.eup %1797  ;;  %v425_v22 = vadd.f32 1.0, %v1796_v19  ;;  %1809 = verf.f32 %v412_v20  ;;  %v1674_v8 = vpop.f32.mrb[12].mxu1 }
 0x1d4   :  { %v1800_v23 = vpop.eup %1799  ;;  %v423_v24 = vadd.f32 1.0, %v1798_v21  ;;  %v613_v9 = vadd.f32 %v1674_v8, %v1528_v7  ;;  %v604_v10 = vpop.f32.mrb[13].mxu1 }
 0x1d5   :  { %v1802_v25 = vpop.eup %1801  ;;  %v426_v29 = vadd.f32 1.0, %v1800_v23  ;;  %v433_v35 = vmul.f32 %v425_v22, %v401_v27  ;;  %v605_v11 = vadd.f32 %v1528_v7, %v604_v10  ;;  %v1675_v12 = vpop.f32.mrb[14].mxu1 }
 0x1d6   :  { %v424_v33 = vadd.f32 1.0, %v1802_v25  ;;  %v431_v38 = vmul.f32 %v423_v24, %v399_v31  ;;  %v645_v13 = vmul.f32 0.70710677, %v613_v9  ;;  %v616_v14 = vadd.f32 %v1675_v12, %v1528_v7  ;;  %v607_v15 = vpop.f32.mrb[15].mxu1 }
 0x1d7   :  { %v434_v36 = vmul.f32 %v426_v29, %v402_v28  ;;  %v643_v16 = vmul.f32 0.70710677, %v605_v11  ;;  %v608_v17 = vadd.f32 %v1528_v7, %v607_v15  ;;  %v637_v31 = vmul.f32 0.5, %v613_v9 }
 0x1d8   :  { %v432_v39 = vmul.f32 %v424_v33, %v400_v32  ;;  %1811 = verf.f32 %v645_v13  ;;  %v646_v18 = vmul.f32 0.70710677, %v616_v14  ;;  %v635_v34 = vmul.f32 0.5, %v605_v11 }
 0x1d9   :  { %v676_v41 = vpack.c.bf16 %v434_v36, %v433_v35  ;;  %1813 = verf.f32 %v643_v16  ;;  %v644_v19 = vmul.f32 0.70710677, %v608_v17  ;;  %v638_v37 = vmul.f32 0.5, %v616_v14 }
 0x1da   :  { %v1804_v42 = vpop.eup %1803  ;;  %v675_v44 = vpack.c.bf16 %v432_v39, %v431_v38  ;;  %1815 = verf.f32 %v646_v18  ;;  %v636_v40 = vmul.f32 0.5, %v608_v17 }
 0x1db   :  { %v1806_v45 = vpop.eup %1805  ;;  %v429_v46 = vadd.f32 1.0, %v1804_v42  ;;  %v733_v47 = vsel %vm43_vm1, %v676_v41, 0  ;;  %1817 = verf.f32 %v644_v19  ;;  %v1678_v20 = vpop.f32.mrb[16].mxu1 }
 0x1dc   :  { %v1808_v48 = vpop.eup %1807  ;;  %1687 = vmatpush3.bf16.xpose.msra.mxu1 %v733_v47  ;;  %v687_v50 = vsel %vm43_vm1, %v675_v44, 0  ;;  %v427_v53 = vadd.f32 1.0, %v1806_v45  ;;  %v629_v21 = vadd.f32 %v1678_v20, %v1528_v7  ;;  %v620_v22 = vpop.f32.mrb[17].mxu1 }
 0x1dd   :  { %v430_v52 = vadd.f32 1.0, %v1808_v48  ;;  %1681 = vmatpush3.bf16.xpose.msra.mxu0 %v687_v50  ;;  %1698 = vmatprep.subr.bf16.mxu1 %v1875_v1  ;;  %v1810_v55 = vpop.eup %1809  ;;  %v437_v58 = vmul.f32 %v429_v46, %v405_v49  ;;  %v621_v23 = vadd.f32 %v1528_v7, %v620_v22  ;;  %v1679_v24 = vpop.f32.mrb[18].mxu1 }
 0x1de   :  { %1692 = vmatprep.subr.bf16.mxu0 %v1875_v1  ;;  %v428_v61 = vadd.f32 1.0, %v1810_v55  ;;  %v435_v63 = vmul.f32 %v427_v53, %v403_v57  ;;  %v649_v25 = vmul.f32 0.70710677, %v629_v21  ;;  %v632_v26 = vadd.f32 %v1679_v24, %v1528_v7  ;;  %v623_v27 = vpop.f32.mrb[19].mxu1 }
 0x1df   :  { %v438_v59 = vmul.f32 %v430_v52, %v406_v54  ;;  %v647_v28 = vmul.f32 0.70710677, %v621_v23  ;;  %v624_v29 = vadd.f32 %v1528_v7, %v623_v27  ;;  %v641_v49 = vmul.f32 0.5, %v629_v21 }
 0x1e0   :  { %v436_v0 = vmul.f32 %v428_v61, %v404_v60  ;;  %1819 = verf.f32 %v649_v25  ;;  %v650_v30 = vmul.f32 0.70710677, %v632_v26  ;;  %v639_v53 = vmul.f32 0.5, %v621_v23 }
 0x1e1   :  { %v678_v2 = vpack.c.bf16 %v438_v59, %v437_v58  ;;  %1821 = verf.f32 %v647_v28  ;;  %v648_v32 = vmul.f32 0.70710677, %v624_v29  ;;  %v642_v55 = vmul.f32 0.5, %v632_v26 }
 0x1e2   :  { %v677_v5 = vpack.c.bf16 %v436_v0, %v435_v63  ;;  %v1812_v33 = vpop.eup %1811  ;;  %1823 = verf.f32 %v650_v30  ;;  %v640_v58 = vmul.f32 0.5, %v624_v29 }
 0x1e3   :  { %1689 = vmatmul.mubr.msk.bf16.vlgmr.msra.gmra.mrb[20].mxu1 %vm43_vm1, %v1564_v62  ;;  %v819_v4 = vsel %vm43_vm1, %v678_v2, 0  ;;  %v1814_v35 = vpop.eup %1813  ;;  %v661_v36 = vadd.f32 1.0, %v1812_v33  ;;  %1825 = verf.f32 %v648_v32 }
 0x1e4   :  { %1683 = vmatmul.mubr.msk.bf16.vlgmr.msra.gmra.mrb[20].mxu0 %vm43_vm1, %v1563_v3  ;;  %1699 = vmatpush3.bf16.xpose.msra.mxu1 %v819_v4  ;;  %v776_v6 = vsel %vm43_vm1, %v677_v5, 0  ;;  %v1816_v38 = vpop.eup %1815  ;;  %v659_v39 = vadd.f32 1.0, %v1814_v35 }
 0x1e5   :  { %1700 = vmatprep.mubr.msk.bf16.mxu1 %vm1876_vm0, %v1875_v1  ;;  %1694 = vmatprep.mubr.msk.bf16.mxu0 %vm1876_vm0, %v1875_v1  ;;  %v1818_v41 = vpop.eup %1817  ;;  %v669_v42 = vmul.f32 %v661_v36, %v637_v31  ;;  %v662_v43 = vadd.f32 1.0, %v1816_v38 }
 0x1e6   :  { %1693 = vmatpush3.bf16.xpose.msra.mxu0 %v776_v6  ;;  %1710 = vmatprep.subr.bf16.mxu1 %v1875_v1  ;;  %v667_v44 = vmul.f32 %v659_v39, %v635_v34  ;;  %v660_v45 = vadd.f32 1.0, %v1818_v41 }
 0x1e7   :  { %1704 = vmatprep.subr.bf16.mxu0 %v1875_v1  ;;  %v670_v46 = vmul.f32 %v662_v43, %v638_v37 }
 0x1e8   :  { %v668_v47 = vmul.f32 %v660_v45, %v636_v40 }
 0x1e9   :  { %v680_v48 = vpack.c.bf16 %v670_v46, %v669_v42 }
 0x1ea   :  { %v1820_v50 = vpop.eup %1819  ;;  %v679_v51 = vpack.c.bf16 %v668_v47, %v667_v44 }
 0x1eb   :  { %1701 = vmatmul.mubr.msk.bf16.vlgmr.msra.gmra.mrb[24].mxu1 %vm43_vm1, %v1564_v62  ;;  %v1822_v54 = vpop.eup %1821  ;;  %v665_v52 = vadd.f32 1.0, %v1820_v50 }
 0x1ec   :  { %1712 = vmatprep.mubr.msk.bf16.mxu1 %vm1876_vm0, %v1875_v1  ;;  %1711 = vmatpush3.bf16.msra.mxu1 %v680_v48  ;;  %v1824_v56 = vpop.eup %1823  ;;  %v663_v57 = vadd.f32 1.0, %v1822_v54 }
 0x1ed   :  { %1695 = vmatmul.mubr.msk.bf16.vlgmr.msra.gmra.mrb[24].mxu0 %vm43_vm1, %v1563_v3  ;;  %1722 = vmatprep.subr.bf16.mxu1 %v1875_v1  ;;  %v1826_v59 = vpop.eup %1825  ;;  %v2030_v60 = vmul.f32 %v665_v52, %v641_v49  ;;  %v666_v61 = vadd.f32 1.0, %v1824_v56 }
 0x1ee   :  { %1706 = vmatprep.mubr.msk.bf16.mxu0 %vm1876_vm0, %v1875_v1  ;;  %1705 = vmatpush3.bf16.msra.mxu0 %v679_v51  ;;  %v2033_v62 = vmul.f32 %v663_v57, %v639_v53  ;;  %v664_v63 = vadd.f32 1.0, %v1826_v59 }
 0x1ef   :  { %1716 = vmatprep.subr.bf16.mxu0 %v1875_v1  ;;  %v2035_v0 = vmul.f32 %v666_v61, %v642_v55 }
 0x1f0   :  { %v2037_v2 = vmul.f32 %v664_v63, %v640_v58 }
 0x1f1   :  { %v682_v3 = vpack.c.bf16 %v2035_v0, %v2030_v60  ;;  %v1782_v60 = vld [vmem:[%s2146_s2 + $0x48] sm:$0xff]  }
 0x1f2   :  { %v681_v4 = vpack.c.bf16 %v2037_v2, %v2033_v62  ;;  %v1781_v62 = vld [vmem:[%s2146_s2 + $0x40] sm:$0xff]  }
 0x2b6   :  { %v769_v5 = vpop.f32.mrb[20].mxu1 }
 0x2b7   :  { %v723_v6 = vpop.f32.mrb[20].mxu0  ;;  %v1690_v7 = vpop.f32.mrb[21].mxu1  ;;  %v864_v14 = vsel %vm203_vm2, %v769_v5, -inf }
 0x2b8   :  { %v1684_v8 = vpop.f32.mrb[21].mxu0  ;;  %v772_v9 = vpop.f32.mrb[22].mxu1  ;;  %v861_v10 = vsel %vm203_vm2, %v723_v6, -inf }
 0x2b9   :  { %v1691_v11 = vpop.f32.mrb[23].mxu1  ;;  %862 = vmax.xlane.f32.xlu0 %v861_v10  ;;  %v726_v12 = vpop.f32.mrb[22].mxu0 }
 0x2ba   :  { %v1685_v13 = vpop.f32.mrb[23].mxu0 }
 0x2bd   :  { %865 = vmax.xlane.f32.xlu0 %v864_v14 }
 0x2be   :  { %v855_v15 = vpop.f32.mrb[24].mxu1 }
 0x2bf   :  { %v1702_v16 = vpop.f32.mrb[25].mxu1  ;;  %v870_v24 = vsel %vm203_vm2, %v855_v15, -inf }
 0x2c0   :  { %v812_v17 = vpop.f32.mrb[24].mxu0  ;;  %v858_v18 = vpop.f32.mrb[26].mxu1 }
 0x2c1   :  { %v1696_v19 = vpop.f32.mrb[25].mxu0  ;;  %v1703_v20 = vpop.f32.mrb[27].mxu1  ;;  %v867_v21 = vsel %vm203_vm2, %v812_v17, -inf  ;;  %v1783_v18 = vld [vmem:[%s2146_s2 + $0x50] sm:$0xff]  }
 0x2c2   :  { %868 = vmax.xlane.f32.xlu1 %v867_v21  ;;  %v815_v22 = vpop.f32.mrb[26].mxu0  ;;  %v1784_v19 = vld [vmem:[%s2146_s2 + $0x58] sm:$0xff]   ;;  %v1542_v20 = vld [vmem:[%s2147_s3 + $0x6] ss:$0 sm:$0xff] }
 0x2c3   :  { %v1697_v23 = vpop.f32.mrb[27].mxu0 }
 0x2c6   :  { %871 = vmax.xlane.f32.xlu1 %v870_v24 }
 0x346   :  { %v863_v25 = vpop.xlane.xlu0 %862 }
 0x347   :  { %v873_v26 = vsub.f32 %v723_v6, %v863_v25 }
 0x349   :  { %v877_v27 = vmul.f32 1.442695, %v873_v26 }
 0x34a   :  { %v866_v28 = vpop.xlane.xlu0 %865 }
 0x34b   :  { %1827 = vpow2.f32 %v877_v27  ;;  %v874_v29 = vsub.f32 %v769_v5, %v866_v28 }
 0x34d   :  { %v879_v30 = vmul.f32 1.442695, %v874_v29 }
 0x34f   :  { %1829 = vpow2.f32 %v879_v30  ;;  %v869_v31 = vpop.xlane.xlu1 %868 }
 0x350   :  { %v875_v32 = vsub.f32 %v812_v17, %v869_v31 }
 0x352   :  { %v881_v33 = vmul.f32 1.442695, %v875_v32 }
 0x353   :  { %v872_v34 = vpop.xlane.xlu1 %871 }
 0x354   :  { %1831 = vpow2.f32 %v881_v33  ;;  %v876_v35 = vsub.f32 %v855_v15, %v872_v34 }
 0x355   :  { %v1828_v36 = vpop.eup %1827 }
 0x356   :  { %v883_v37 = vmul.f32 1.442695, %v876_v35  ;;  %v885_v38 = vsel %vm203_vm2, %v1828_v36, 0.0 }
 0x357   :  { %886 = vadd.xlane.f32.xlu0 %v885_v38 }
 0x358   :  { %1833 = vpow2.f32 %v883_v37 }
 0x359   :  { %v1830_v39 = vpop.eup %1829 }
 0x35a   :  { %v888_v40 = vsel %vm203_vm2, %v1830_v39, 0.0 }
 0x35b   :  { %889 = vadd.xlane.f32.xlu1 %v888_v40  ;;  %v1786_v40 = vld [vmem:[%s2146_s2 + $0x60] sm:$0xff]  }
 0x35e   :  { %v1832_v41 = vpop.eup %1831 }
 0x35f   :  { %v891_v42 = vsel %vm203_vm2, %v1832_v41, 0.0 }
 0x360   :  { %892 = vadd.xlane.f32.xlu0 %v891_v42  ;;  %v1788_v42 = vld [vmem:[%s2146_s2 + $0x68] sm:$0xff]  }
 0x362   :  { %v1834_v43 = vpop.eup %1833 }
 0x363   :  { %v894_v44 = vsel %vm203_vm2, %v1834_v43, 0.0 }
 0x364   :  { %895 = vadd.xlane.f32.xlu1 %v894_v44 }
 0x3e4   :  { %v887_v45 = vpop.xlane.xlu0 %886 }
 0x3e5   :  { %1835 = vrcp.f32 %v887_v45 }
 0x3e8   :  { %v890_v46 = vpop.xlane.xlu1 %889 }
 0x3e9   :  { %1837 = vrcp.f32 %v890_v46 }
 0x3ed   :  { %v893_v47 = vpop.xlane.xlu0 %892 }
 0x3ee   :  { %1839 = vrcp.f32 %v893_v47 }
 0x3ef   :  { %v1836_v48 = vpop.eup %1835 }
 0x3f0   :  { %v901_v49 = vmul.f32 %v1836_v48, %v1828_v36 }
 0x3f1   :  { %v896_v50 = vpop.xlane.xlu1 %895 }
 0x3f2   :  { %1841 = vrcp.f32 %v896_v50  ;;  %v905_v51 = vpack.c.bf16 %v901_v49, %v901_v49 }
 0x3f3   :  { %v1838_v53 = vpop.eup %1837 }
 0x3f4   :  { %v902_v54 = vmul.f32 %v1838_v53, %v1830_v39  ;;  %1707 = vmatmul.mubr.msk.bf16.vlgmr.msra.gmra.mrb[28].mxu0 %vm203_vm2, %v905_v51  ;;  %v1785_v39 = vld [vmem:[%s2146_s2 + $0x70] sm:$0xff]  }
 0x3f5   :  { %1717 = vmatpush3.bf16.msra.mxu0 %v681_v4  ;;  %1718 = vmatprep.mubr.msk.bf16.mxu0 %vm1876_vm0, %v1875_v1 }
 0x3f6   :  { %v906_v52 = vpack.c.bf16 %v902_v54, %v902_v54  ;;  %1728 = vmatprep.subr.bf16.mxu0 %v1781_v62 }
 0x3f8   :  { %v1840_v55 = vpop.eup %1839  ;;  %1713 = vmatmul.mubr.msk.bf16.vlgmr.msra.gmra.mrb[28].mxu1 %vm203_vm2, %v906_v52 }
 0x3f9   :  { %v903_v56 = vmul.f32 %v1840_v55, %v1832_v41  ;;  %1723 = vmatpush3.bf16.msra.mxu1 %v682_v3  ;;  %1724 = vmatprep.mubr.msk.bf16.mxu1 %vm1876_vm0, %v1875_v1  ;;  %v1787_v41 = vld [vmem:[%s2146_s2 + $0x78] sm:$0xff]  }
 0x3fa   :  { %1736 = vmatprep.subr.bf16.mxu1 %v1783_v18 }
 0x3fb   :  { %v907_v57 = vpack.c.bf16 %v903_v56, %v903_v56 }
 0x3fc   :  { %v1842_v58 = vpop.eup %1841 }
 0x3fd   :  { %v904_v59 = vmul.f32 %v1842_v58, %v1834_v43  ;;  %1719 = vmatmul.mubr.msk.bf16.vlgmr.msra.gmra.mrb[32].mxu0 %vm203_vm2, %v907_v57  ;;  %v1547_v43 = vld [vmem:[%s2147_s3 + $0x7] ss:$0 sm:$0xff] }
 0x3fe   :  { %1729 = vmatpush3.bf16.msra.mxu0 %v1781_v62 }
 0x3ff   :  { %v908_v61 = vpack.c.bf16 %v904_v59, %v904_v59  ;;  %1730 = vmatprep.subr.bf16.mxu0 %v1782_v60 }
 0x401   :  { %1725 = vmatmul.mubr.msk.bf16.vlgmr.msra.gmra.mrb[32].mxu1 %vm203_vm2, %v908_v61 }
 0x402   :  { %1731 = vmatpush3.bf16.msra.mxu0 %v1782_v60  ;;  %1737 = vmatpush3.bf16.msra.mxu1 %v1783_v18  ;;  %v1558_v18 = vld [vmem:[%s2147_s3 + $0x8] ss:$0 sm:$0xff] }
 0x403   :  { %1744 = vmatprep.subr.bf16.mxu0 %v1875_v1  ;;  %1738 = vmatprep.subr.bf16.mxu1 %v1784_v19 }
 0x406   :  { %1739 = vmatpush3.bf16.msra.mxu1 %v1784_v19 }
 0x407   :  { %1752 = vmatprep.subr.bf16.mxu1 %v1875_v1 }
 0x4c7   :  { %v946_v63 = vpop.f32.mrb[28].mxu0 }
 0x4c8   :  { %v1708_v0 = vpop.f32.mrb[29].mxu0 }
 0x4c9   :  { %v949_v2 = vpop.f32.mrb[30].mxu0 }
 0x4ca   :  { %v1709_v3 = vpop.f32.mrb[31].mxu0 }
 0x4cb   :  { %v989_v4 = vpop.f32.mrb[28].mxu1 }
 0x4cc   :  { %v1086_v5 = vpack.c.bf16 %v989_v4, %v946_v63  ;;  %v1714_v6 = vpop.f32.mrb[29].mxu1 }
 0x4cd   :  { %v992_v7 = vpop.f32.mrb[30].mxu1 }
 0x4ce   :  { %v1715_v8 = vpop.f32.mrb[31].mxu1  ;;  %1732 = vmatprep.mubr.msk.bf16.mxu0 %vm43_vm1, %v1086_v5 }
 0x4d0   :  { %v1032_v9 = vpop.f32.mrb[32].mxu0 }
 0x4d1   :  { %v1720_v10 = vpop.f32.mrb[33].mxu0 }
 0x4d2   :  { %v1035_v11 = vpop.f32.mrb[34].mxu0 }
 0x4d3   :  { %v1721_v12 = vpop.f32.mrb[35].mxu0  ;;  %v1789_v11 = vld [vmem:[%s2146_s2 + $0x80] sm:$0xff]  }
 0x4d4   :  { %v1075_v13 = vpop.f32.mrb[32].mxu1  ;;  %v1790_v12 = vld [vmem:[%s2146_s2 + $0x88] sm:$0xff]  }
 0x4d5   :  { %v1087_v14 = vpack.c.bf16 %v1075_v13, %v1032_v9  ;;  %v1726_v15 = vpop.f32.mrb[33].mxu1 }
 0x4d6   :  { %v1078_v16 = vpop.f32.mrb[34].mxu1 }
 0x4d7   :  { %v1727_v17 = vpop.f32.mrb[35].mxu1  ;;  %1733 = vmatmul.mubr.msk.bf16.vlgmr.msra.gmra.mrb[36].mxu0 %vm43_vm1, %v1087_v14 }
 0x4d8   :  { %1748 = vmatprep.mubr.msk.bf16.mxu0 %vm1876_vm0, %v1875_v1  ;;  %1745 = vmatpush3.bf16.msra.mxu0 %v1786_v40 }
 0x4d9   :  { %1746 = vmatprep.subr.bf16.mxu0 %v1875_v1 }
 0x4dc   :  { %1747 = vmatpush3.bf16.msra.mxu0 %v1788_v42 }
 0x4dd   :  { %1760 = vmatprep.subr.bf16.mxu0 %v1875_v1 }
 0x5aa   :  { %v1734_v21 = vpop.f32.mrb[36].mxu0 }
 0x5ab   :  { %v1153_v22 = vadd.f32 %v1734_v21, %v1542_v20  ;;  %v1144_v23 = vpop.f32.mrb[37].mxu0 }
 0x5ac   :  { %v1145_v24 = vadd.f32 %v1542_v20, %v1144_v23  ;;  %v1735_v25 = vpop.f32.mrb[38].mxu0 }
 0x5ad   :  { %v1165_v26 = vmul.f32 0.01, %v1153_v22  ;;  %v1156_v27 = vadd.f32 %v1735_v25, %v1542_v20  ;;  %v1147_v28 = vpop.f32.mrb[39].mxu0  ;;  %vm1161_vm2 = vcmp.gt.f32.partialorder %v1153_v22, 0.0 }
 0x5ae   :  { %v1163_v29 = vmul.f32 0.01, %v1145_v24  ;;  %v1148_v30 = vadd.f32 %v1542_v20, %v1147_v28  ;;  %vm1159_vm8 = vcmp.gt.f32.partialorder %v1145_v24, 0.0 }
 0x5af   :  { %vm1162_vm9 = vcmp.gt.f32.partialorder %v1156_v27, 0.0  ;;  %v1166_v31 = vmul.f32 0.01, %v1156_v27  ;;  %v1169_v33 = vsel %vm1161_vm2, %v1153_v22, %v1165_v26 }
 0x5b0   :  { %vm1160_vm10 = vcmp.gt.f32.partialorder %v1148_v30, 0.0  ;;  %v1164_v32 = vmul.f32 0.01, %v1148_v30  ;;  %v1167_v35 = vsel %vm1159_vm8, %v1145_v24, %v1163_v29 }
 0x5b1   :  { %v1170_v34 = vsel %vm1162_vm9, %v1156_v27, %v1166_v31 }
 0x5b2   :  { %v1177_v36 = vpack.c.bf16 %v1170_v34, %v1169_v33  ;;  %v1168_v37 = vsel %vm1160_vm10, %v1148_v30, %v1164_v32  ;;  %v1559_v34 = vld [vmem:[%s2147_s3 + $0x9] ss:$0 sm:$0xff]  ;;  %s1851_s3 = scalar_lea.vmem %s1490_s8, 256 }
 0x5b3   :  { %v1176_v38 = vpack.c.bf16 %v1168_v37, %v1167_v35  ;;  %p1852_p0 = scmp.ne.s32.totalorder %s1490_s8, %s1851_s3  ;;  %p1857_p2 = scmp.lt.s32.totalorder %s1851_s3, %s1851_s3 }
 0x5b5   :  { %1740 = vmatprep.mubr.msk.bf16.mxu1 %vm43_vm1, %v1176_v38  ;;  %p1858_p3 = por %p1857_p2, %p1856_p1 }
 0x5b6   :  { %1741 = vmatmul.mubr.msk.bf16.vlgmr.msra.gmra.mrb[36].mxu1 %vm43_vm1, %v1177_v36 }
 0x5b7   :  { %1756 = vmatprep.mubr.msk.bf16.mxu1 %vm1876_vm0, %v1875_v1  ;;  %1753 = vmatpush3.bf16.msra.mxu1 %v1785_v39  ;;  %p1859_p4 = pnand %p1858_p3, %p1852_p0 }
 0x5b8   :  { %1754 = vmatprep.subr.bf16.mxu1 %v1875_v1 }
 0x5bb   :  { %1755 = vmatpush3.bf16.msra.mxu1 %v1787_v41 }
 0x689   :  { %v1742_v44 = vpop.f32.mrb[36].mxu1 }
 0x68a   :  { %v1243_v45 = vadd.f32 %v1742_v44, %v1547_v43  ;;  %v1234_v46 = vpop.f32.mrb[37].mxu1 }
 0x68b   :  { %v1235_v47 = vadd.f32 %v1547_v43, %v1234_v46  ;;  %v1743_v48 = vpop.f32.mrb[38].mxu1 }
 0x68c   :  { %v1255_v49 = vmul.f32 0.70710677, %v1243_v45  ;;  %v1246_v50 = vadd.f32 %v1743_v48, %v1547_v43  ;;  %v1237_v51 = vpop.f32.mrb[39].mxu1  ;;  %v1251_v60 = vmul.f32 0.5, %v1243_v45 }
 0x68d   :  { %v1253_v53 = vmul.f32 0.70710677, %v1235_v47  ;;  %v1238_v54 = vadd.f32 %v1547_v43, %v1237_v51  ;;  %v1249_v2 = vmul.f32 0.5, %v1235_v47 }
 0x68e   :  { %1843 = verf.f32 %v1255_v49  ;;  %v1256_v52 = vmul.f32 0.70710677, %v1246_v50  ;;  %v1252_v63 = vmul.f32 0.5, %v1246_v50 }
 0x68f   :  { %1845 = verf.f32 %v1253_v53  ;;  %v1254_v55 = vmul.f32 0.70710677, %v1238_v54  ;;  %v1250_v3 = vmul.f32 0.5, %v1238_v54 }
 0x690   :  { %1847 = verf.f32 %v1256_v52 }
 0x691   :  { %1849 = verf.f32 %v1254_v55 }
 0x698   :  { %v1844_v56 = vpop.eup %1843 }
 0x699   :  { %v1846_v57 = vpop.eup %1845  ;;  %v1263_v58 = vadd.f32 1.0, %v1844_v56 }
 0x69a   :  { %v1848_v59 = vpop.eup %1847  ;;  %v1261_v61 = vadd.f32 1.0, %v1846_v57 }
 0x69b   :  { %v1850_v62 = vpop.eup %1849  ;;  %v1264_v0 = vadd.f32 1.0, %v1848_v59  ;;  %v1267_v5 = vmul.f32 %v1263_v58, %v1251_v60 }
 0x69c   :  { %v1262_v4 = vadd.f32 1.0, %v1850_v62  ;;  %v1265_v7 = vmul.f32 %v1261_v61, %v1249_v2 }
 0x69d   :  { %v1268_v6 = vmul.f32 %v1264_v0, %v1252_v63 }
 0x69e   :  { %v1266_v8 = vmul.f32 %v1262_v4, %v1250_v3 }
 0x69f   :  { %v1270_v9 = vpack.c.bf16 %v1268_v6, %v1267_v5 }
 0x6a0   :  { %v1269_v10 = vpack.c.bf16 %v1266_v8, %v1265_v7 }
 0x6a1   :  { %1757 = vmatmul.mubr.msk.bf16.vlgmr.msra.gmra.mrb[40].mxu1 %vm43_vm1, %v1270_v9 }
 0x6a2   :  { %1749 = vmatmul.mubr.msk.bf16.vlgmr.msra.gmra.mrb[40].mxu0 %vm43_vm1, %v1269_v10 }
 0x6a3   :  { %1764 = vmatprep.mubr.msk.bf16.mxu0 %vm1876_vm0, %v1875_v1  ;;  %1761 = vmatpush3.bf16.msra.mxu0 %v1789_v11 }
 0x6a4   :  { %1762 = vmatprep.subr.bf16.mxu0 %v1875_v1 }
 0x6a7   :  { %1763 = vmatpush3.bf16.msra.mxu0 %v1790_v12 }
 0x774   :  { %v1384_v13 = vpop.f32.mrb[40].mxu1 }
 0x775   :  { %v1392_v14 = vsel %vm43_vm1, %v1384_v13, 0.0  ;;  %v1328_v15 = vpop.f32.mrb[40].mxu0  ;;  %v1758_v16 = vpop.f32.mrb[41].mxu1 }
 0x776   :  { %v1391_v17 = vsel %vm43_vm1, %v1328_v15, 0.0  ;;  %v1750_v19 = vpop.f32.mrb[41].mxu0  ;;  %v1387_v20 = vpop.f32.mrb[42].mxu1 }
 0x777   :  { %v1393_v21 = vadd.f32 %v1392_v14, %v1391_v17  ;;  %v1395_v1 = vsel %vm43_vm1, %v1387_v20, 0.0  ;;  %v1331_v22 = vpop.f32.mrb[42].mxu0  ;;  %v1759_v23 = vpop.f32.mrb[43].mxu1 }
 0x778   :  { %v1394_v24 = vsel %vm43_vm1, %v1331_v22, 0.0  ;;  %v1751_v25 = vpop.f32.mrb[43].mxu0 }
 0x779   :  { %v1402_v26 = vadd.f32 %v1558_v18, %v1393_v21  ;;  %v1396_v27 = vadd.f32 %v1395_v1, %v1394_v24 }
 0x77b   :  { %v1406_v28 = vmul.f32 0.01, %v1402_v26  ;;  %v1403_v29 = vadd.f32 %v1558_v18, %v1396_v27  ;;  %vm1404_vm0 = vcmp.gt.f32.partialorder %v1402_v26, 0.0 }
 0x77d   :  { %vm1405_vm11 = vcmp.gt.f32.partialorder %v1403_v29, 0.0  ;;  %v1407_v30 = vmul.f32 0.01, %v1403_v29  ;;  %v1408_v31 = vsel %vm1404_vm0, %v1402_v26, %v1406_v28 }
 0x77f   :  { %v1409_v32 = vsel %vm1405_vm11, %v1403_v29, %v1407_v30 }
 0x780   :  { %v1415_v33 = vpack.c.bf16 %v1409_v32, %v1408_v31 }
 0x782   :  { %1765 = vmatmul.mubr.msk.bf16.vlgmr.msra.gmra.mrb[44].mxu0 %vm43_vm1, %v1415_v33 }
 0x855   :  { %v1469_v35 = vpop.f32.mrb[44].mxu0 }
 0x856   :  { %v1470_v36 = vadd.f32 %v1559_v34, %v1469_v35  ;;  %v1766_v37 = vpop.f32.mrb[45].mxu0 }
 0x857   :  { %v1472_v38 = vpop.f32.mrb[46].mxu0 }
 0x858   :  { %vm1476_vm12 = vcmp.gt.f32.partialorder %v1470_v36, 0.0  ;;  %v1478_v39 = vmul.f32 0.01, %v1470_v36  ;;  %v1473_v40 = vadd.f32 %v1559_v34, %v1472_v38  ;;  %v1767_v41 = vpop.f32.mrb[47].mxu0 }
 0x85a   :  { %v1480_v42 = vsel %vm1476_vm12, %v1470_v36, %v1478_v39  ;;  %vm1477_vm13 = vcmp.gt.f32.partialorder %v1473_v40, 0.0  ;;  %v1479_v43 = vmul.f32 0.01, %v1473_v40 }
 0x85b   :  { %1482 = vst.msk [vmem:[#allocation2] sm:$0xff] %vm43_vm1, %v1480_v42 }
 0x85c   :  { %v1481_v44 = vsel %vm1477_vm13, %v1473_v40, %v1479_v43 }
 0x85d   :  { %1483 = vst.msk [vmem:[#allocation2 + $0x8] sm:$0xff] %vm43_vm1, %v1481_v44 }
 0x85e   :  { %1862 = shalt.err (!%p1859_p4)
}
 0x85f   :  { %s1863_s11 = scalar_lea.hbm %s2148_s4, 256 }
 0x860   :  { %p1864_p5 = scmp.ne.s32.totalorder %s2148_s4, %s1863_s11  ;;  %p1867_p6 = scmp.lt.u32.totalorder %s1863_s11, %s2148_s4 }
 0x862   :  { %p1869_p7 = pnand %p1867_p6, %p1864_p5 }
 0x864   :  { %1872 = shalt.err (!%p1869_p7)
}
 0x865   :  { %s1878_s16 = smov 128   ;;  %s1879_s17 = smov 8  }
 0x866   :  { %1495 = dma.vmem_to_hbm [thread:$0]  %s1490_s8, 256, %s2148_s4, [#allocation3], %s1878_s16, %s1878_s16, %s1879_s17  }
 0x867   :  { %1873 = dma.done.wait [#allocation3], 256  }
 0x868   :  { %1874 = vsyncadd [#allocation3], 4294967040 }
 0x869   :  { %1499 = vsyncpa [#allocation3], 1 }

</bundles_post_ra>
